<compile_context>
chip_gen: v5e
topology: v5e:2x2
jax: 0.10.0
libtpu: 0.0.40
codegen_flags: <defaults>
</compile_context>

<pallas_src>
import jax
import jax.numpy as jnp
from jax import lax
from jax.experimental import pallas as pl
from jax.experimental.pallas import tpu as pltpu

_LANE = 128


def _round_up(x, m):
    return ((x + m - 1) // m) * m


def _sublane(dtype):
    return 16 if jnp.dtype(dtype).itemsize == 2 else 8


def _hw_config():
    """Generation-aware VMEM budget / compiler limit and 2-TensorCore detection."""
    try:
        vmem_cap = int(pltpu.get_tpu_info().vmem_capacity_bytes)
    except Exception:
        vmem_cap = 64 << 20  # conservative fallback (v7x per-core VMEM)
    vmem_limit = int(vmem_cap * 0.72)   # ~92 MiB on v5e/v6e, ~46 MiB on v7x
    budget = int(vmem_limit * 0.9)      # tile-selection target, consistent with the limit
    two_tc = vmem_cap <= (64 << 20)     # v7x heuristic: 64 MiB/TC, 2 TCs per chip
    return budget, vmem_limit, two_tc


def _vmem_bytes(tm, th, d_pad, h_pad, cbytes, obytes, io_bufs=2):
    weights = 2 * 3 * th * d_pad * cbytes           # wg/wu/w2 tiles, double-buffered
    io = io_bufs * tm * d_pad * (cbytes + obytes)   # x tile + out tile
    acc = tm * d_pad * 4                            # resident f32 accumulator
    bias = 2 * (2 * h_pad + d_pad) * 4              # resident biases (+ slack)
    return weights + io + acc + bias


def make_swiglu_plan(d_model, hidden, *, compute_dtype=jnp.bfloat16,
                     out_dtype=jnp.float32, th=None, tm_cap=512):
    """Pick tiling / padding once per (d_model, hidden, dtype) configuration."""
    cbytes = jnp.dtype(compute_dtype).itemsize
    obytes = jnp.dtype(out_dtype).itemsize
    # v6e/v7x MXUs are 2x256x256 -> 256-align K/N for bf16; 128 is enough for f32/v5e.
    align = 256 if cbytes == 2 else 128
    sub = _sublane(compute_dtype)
    d_pad = max(_round_up(d_model, align), align)
    budget, vmem_limit, two_tc = _hw_config()

    if th is None:
        candidates = [t for t in (1024, 512, 256, 128) if t >= align]
        h_min = max(_round_up(hidden, align), align)
        fitting = [t for t in candidates
                   if _vmem_bytes(tm_cap, t, d_pad, max(_round_up(hidden, t), t),
                                  cbytes, obytes, io_bufs=2) <= budget]
        exact = [t for t in fitting if max(_round_up(hidden, t), t) == h_min]
        th = exact[0] if exact else (fitting[0] if fitting else align)
    else:
        if th % _LANE != 0 or th <= 0:
            raise ValueError(f"th must be a positive multiple of {_LANE}, got {th}")

    h_pad = max(_round_up(hidden, th), th)
    return dict(d_model=d_model, hidden=hidden,
                compute_dtype=compute_dtype, out_dtype=out_dtype,
                cbytes=cbytes, obytes=obytes, align=align, sub=sub,
                d_pad=d_pad, h_pad=h_pad, th=th, tm_cap=tm_cap,
                budget=budget, vmem_limit=vmem_limit, two_tc=two_tc)


def swiglu_prepack(w1, b1, w2, b2, plan):
    """One-time repack of PyTorch-layout params (call once, reuse every forward).
    w1: (2*hidden, d_model), b1: (2*hidden,), w2: (d_model, hidden), b2: (d_model,).
    No transposes: weights stay in (out_features, in_features) layout."""
    d_model, hidden = plan["d_model"], plan["hidden"]
    d_pad, h_pad, th = plan["d_pad"], plan["h_pad"], plan["th"]
    cdt = plan["compute_dtype"]
    n_hb = h_pad // th
    wg = jnp.pad(w1[:hidden, :], ((0, h_pad - hidden), (0, d_pad - d_model))).astype(cdt)
    wu = jnp.pad(w1[hidden:, :], ((0, h_pad - hidden), (0, d_pad - d_model))).astype(cdt)
    w2p = jnp.pad(w2, ((0, d_pad - d_model), (0, h_pad - hidden))).astype(cdt)
    bg = jnp.pad(b1[:hidden], (0, h_pad - hidden)).reshape(n_hb, th).astype(jnp.float32)
    bu = jnp.pad(b1[hidden:], (0, h_pad - hidden)).reshape(n_hb, th).astype(jnp.float32)
    b2p = jnp.pad(b2, (0, d_pad - d_model)).reshape(1, d_pad).astype(jnp.float32)
    return dict(wg=wg, wu=wu, w2=w2p, bg=bg, bu=bu, b2=b2p)


def _swiglu_kernel(x_ref, wg_ref, wu_ref, bg_ref, bu_ref, w2_ref, b2_ref,
                   o_ref, acc_ref):
    # x_ref:  (tm, d_pad)           wg_ref/wu_ref: (th, d_pad)  native (out, in) layout
    # bg_ref/bu_ref: (n_hb, th)     w2_ref: (d_pad, th)         b2_ref: (1, d_pad)
    # o_ref:  (tm, d_pad)           acc_ref: (tm, d_pad) f32 scratch
    h = pl.program_id(1)

    @pl.when(h == 0)
    def _init():
        acc_ref[...] = jnp.zeros_like(acc_ref)

    # Contract the last dims: x @ W^T with W in native (out_features, in_features).
    dn = (((1,), (1,)), ((), ()))
    x = x_ref[...]
    a = lax.dot_general(x, wg_ref[...], dn, preferred_element_type=jnp.float32)
    b = lax.dot_general(x, wu_ref[...], dn, preferred_element_type=jnp.float32)
    a = a + bg_ref[pl.ds(h, 1), :]      # resident biases, sliced per hidden tile
    b = b + bu_ref[pl.ds(h, 1), :]
    y = (a * jax.nn.sigmoid(a)) * b     # SiLU(a) * b  (VPU / EUP, hidden under MXU)
    acc_ref[...] += lax.dot_general(y.astype(w2_ref.dtype), w2_ref[...], dn,
                                    preferred_element_type=jnp.float32)

    @pl.when(h == pl.num_programs(1) - 1)
    def _finalize():
        o_ref[...] = (acc_ref[...] + b2_ref[...]).astype(o_ref.dtype)


def swiglu_pallas_packed(x, params, plan, *, tm=None):
    """SwiGLU forward using pre-packed params (the production pattern)."""
    orig_shape = x.shape
    d_model, hidden = plan["d_model"], plan["hidden"]
    d_pad, h_pad, th = plan["d_pad"], plan["h_pad"], plan["th"]
    cdt, odt = plan["compute_dtype"], plan["out_dtype"]
    cbytes, obytes, sub = plan["cbytes"], plan["obytes"], plan["sub"]
    budget = plan["budget"]

    x2d = x.reshape(-1, d_model)
    M = x2d.shape[0]

    single_io = False
    if tm is None:
        tm = min(plan["tm_cap"], _round_up(M, sub))
        if _vmem_bytes(tm, th, d_pad, h_pad, cbytes, obytes, 2) > budget:
            # x/out block indices change only once per hidden sweep, so single
            # buffering them is nearly free and buys tm (arithmetic intensity).
            single_io = True
            floor = min(_round_up(M, sub), 128)
            # TODO(synk): for very large d_model, split d_pad as an inner K loop
            # (pltpu.emit_pipeline) instead of shrinking tm below this floor.
            while tm > floor and _vmem_bytes(tm, th, d_pad, h_pad, cbytes, obytes, 1) > budget:
                tm = max(floor, _round_up(tm // 2, sub))
            while tm > sub and _vmem_bytes(tm, th, d_pad, h_pad, cbytes, obytes, 1) > budget:
                tm = max(sub, _round_up(tm // 2, sub))
        # v7x has 2 TensorCores and the 'parallel' row axis is what gets sharded
        # across them: make sure there are >= 2 row tiles when M is big enough.
        if plan["two_tc"] and M > 2 * sub and _round_up(M, tm) // tm < 2:
            tm = max(sub, _round_up((M + 1) // 2, sub))
    else:
        if tm % sub != 0 or tm <= 0:
            raise ValueError(f"tm must be a positive multiple of {sub}, got {tm}")

    M_pad = _round_up(M, tm)
    n_row_tiles = M_pad // tm
    n_hb = h_pad // th
    grid = (n_row_tiles, n_hb)

    # Only the activations are padded per call; weights were packed once.
    xp = jnp.pad(x2d, ((0, M_pad - M), (0, d_pad - d_model))).astype(cdt)

    io_mode = dict(pipeline_mode=pl.Buffered(1)) if single_io else {}
    x_spec = pl.BlockSpec((tm, d_pad), lambda i, h: (i, 0), **io_mode)
    out_spec = pl.BlockSpec((tm, d_pad), lambda i, h: (i, 0), **io_mode)

    cost = pl.CostEstimate(
        flops=int(6 * M * d_model * hidden),
        transcendentals=int(M * hidden),
        bytes_accessed=int(M_pad * d_pad * (cbytes + obytes)
                           + 3 * d_pad * h_pad * cbytes * n_row_tiles),
    )

    out = pl.pallas_call(
        _swiglu_kernel,
        out_shape=jax.ShapeDtypeStruct((M_pad, d_pad), odt),
        grid_spec=pltpu.PrefetchScalarGridSpec(
            num_scalar_prefetch=0,
            grid=grid,
            in_specs=[
                x_spec,                                           # x       (tm, d_pad)
                pl.BlockSpec((th, d_pad), lambda i, h: (h, 0)),   # w_gate  (th, d_pad)
                pl.BlockSpec((th, d_pad), lambda i, h: (h, 0)),   # w_up    (th, d_pad)
                pl.BlockSpec((n_hb, th), lambda i, h: (0, 0)),    # b_gate  resident
                pl.BlockSpec((n_hb, th), lambda i, h: (0, 0)),    # b_up    resident
                pl.BlockSpec((d_pad, th), lambda i, h: (0, h)),   # w2      (d_pad, th)
                pl.BlockSpec((1, d_pad), lambda i, h: (0, 0)),    # b2      resident
            ],
            out_specs=out_spec,
            scratch_shapes=[pltpu.VMEM((tm, d_pad), jnp.float32)],
        ),
        compiler_params=pltpu.CompilerParams(
            dimension_semantics=("parallel", "arbitrary"),
            vmem_limit_bytes=plan["vmem_limit"],
        ),
        cost_estimate=cost,
    )(xp, params["wg"], params["wu"], params["bg"], params["bu"],
      params["w2"], params["b2"])

    return out[:M, :d_model].reshape(orig_shape)


def swiglu_pallas(x, w1, b1, w2, b2, *, compute_dtype=jnp.bfloat16, tm=None, th=None):
    """Convenience one-shot wrapper (plans + prepacks internally).  In a real
    model, call make_swiglu_plan + swiglu_prepack once and reuse the packed
    params across forward calls."""
    d_model = x.shape[-1]
    hidden = w1.shape[0] // 2
    plan = make_swiglu_plan(d_model, hidden, compute_dtype=compute_dtype,
                            out_dtype=x.dtype, th=th)
    params = swiglu_prepack(w1, b1, w2, b2, plan)
    return swiglu_pallas_packed(x, params, plan, tm=tm)


def swiglu_ref(x, w1, b1, w2, b2):
    h = x @ w1.T + b1
    a, b = jnp.split(h, 2, axis=-1)
    return (a * jax.nn.sigmoid(a) * b) @ w2.T + b2


if __name__ == "__main__":
    batch, seq, d_model, hidden = 2, 8, 32, 64

    key = jax.random.PRNGKey(0)
    kx, k1, k2, k3, k4 = jax.random.split(key, 5)

    x = jax.random.normal(kx, (batch, seq, d_model), dtype=jnp.float32)

    # Deterministic parameter init (PyTorch nn.Linear shapes / layout).
    bound1 = 1.0 / jnp.sqrt(d_model)
    w1 = jax.random.uniform(k1, (hidden * 2, d_model), jnp.float32, -bound1, bound1)
    b1 = jax.random.uniform(k2, (hidden * 2,), jnp.float32, -bound1, bound1)
    bound2 = 1.0 / jnp.sqrt(hidden)
    w2 = jax.random.uniform(k3, (d_model, hidden), jnp.float32, -bound2, bound2)
    b2 = jax.random.uniform(k4, (d_model,), jnp.float32, -bound2, bound2)

    ref = swiglu_ref(x, w1, b1, w2, b2)

    # f32 compute path: strict check of the tiled / accumulated structure.
    out_f32 = jax.block_until_ready(
        swiglu_pallas(x, w1, b1, w2, b2, compute_dtype=jnp.float32))
    assert out_f32.shape == (batch, seq, d_model)
    assert jnp.allclose(out_f32, ref, atol=1e-4, rtol=1e-4), "f32 mismatch vs reference"

    # bf16 MXU path with one-time prepack (the production pattern), f32 accumulation.
    plan = make_swiglu_plan(d_model, hidden, compute_dtype=jnp.bfloat16, out_dtype=x.dtype)
    params = swiglu_prepack(w1, b1, w2, b2, plan)          # hoisted: done once
    out_bf16 = jax.block_until_ready(swiglu_pallas_packed(x, params, plan))
    assert out_bf16.shape == (batch, seq, d_model)
    assert jnp.allclose(out_bf16, ref, atol=5e-2, rtol=5e-2), "bf16 mismatch vs reference"

    print("KERNEL_OK")
</pallas_src>

<mosaic_0001>
module attributes {stable_mosaic.version = 11 : i64} {
  func.func @_swiglu_kernel(%arg0: i32, %arg1: i32, %arg2: memref<16x128xf32, #tpu.memory_space<vmem>>, %arg3: memref<128x128xf32, #tpu.memory_space<vmem>>, %arg4: memref<128x128xf32, #tpu.memory_space<vmem>>, %arg5: memref<1x128xf32, #tpu.memory_space<vmem>>, %arg6: memref<1x128xf32, #tpu.memory_space<vmem>>, %arg7: memref<128x128xf32, #tpu.memory_space<vmem>>, %arg8: memref<1x128xf32, #tpu.memory_space<vmem>>, %arg9: memref<16x128xf32, #tpu.memory_space<vmem>>, %arg10: memref<16x128xf32, #tpu.memory_space<vmem>>) attributes {dimension_semantics = [#tpu.dimension_semantics<parallel>, #tpu.dimension_semantics<arbitrary>], iteration_bounds = array<i64: 1, 1>, scalar_prefetch = 0 : i64, scratch_operands = 1 : i64, tpu.core_type = #tpu.core_type<tc>, window_params = [{transform_indices = @transform_0, window_bounds = array<i64: 16, 128>}, {transform_indices = @transform_1, window_bounds = array<i64: 128, 128>}, {transform_indices = @transform_2, window_bounds = array<i64: 128, 128>}, {pipeline_mode = #tpu.pipeline_mode<synchronous>, transform_indices = @transform_3, window_bounds = array<i64: 1, 128>}, {pipeline_mode = #tpu.pipeline_mode<synchronous>, transform_indices = @transform_4, window_bounds = array<i64: 1, 128>}, {transform_indices = @transform_5, window_bounds = array<i64: 128, 128>}, {pipeline_mode = #tpu.pipeline_mode<synchronous>, transform_indices = @transform_6, window_bounds = array<i64: 1, 128>}, {transform_indices = @transform_7, window_bounds = array<i64: 16, 128>}]} {
    %c0_i32 = arith.constant 0 : i32
    %0 = arith.cmpi eq, %arg1, %c0_i32 : i32
    %1 = arith.extui %0 : i1 to i32
    %c0_i32_0 = arith.constant 0 : i32
    %2 = arith.cmpi ne, %1, %c0_i32_0 : i32
    scf.if %2 {
      %cst_19 = arith.constant 0.000000e+00 : f32
      %31 = vector.broadcast %cst_19 : f32 to vector<16x128xf32>
      %c0_20 = arith.constant 0 : index
      %c0_21 = arith.constant 0 : index
      %32 = vector.load %arg10[%c0_20, %c0_21] : memref<16x128xf32, #tpu.memory_space<vmem>>, vector<16x128xf32>
      tpu.vector_store %arg10[%c0_20, %c0_21], %31 {strides = array<i32>} : memref<16x128xf32, #tpu.memory_space<vmem>>, vector<16x128xf32>,
    } else {
    }
    %c0 = arith.constant 0 : index
    %c0_1 = arith.constant 0 : index
    %3 = vector.load %arg2[%c0, %c0_1] : memref<16x128xf32, #tpu.memory_space<vmem>>, vector<16x128xf32>
    %c0_2 = arith.constant 0 : index
    %c0_3 = arith.constant 0 : index
    %4 = vector.load %arg3[%c0_2, %c0_3] : memref<128x128xf32, #tpu.memory_space<vmem>>, vector<128x128xf32>
    %cst = arith.constant dense<0.000000e+00> : vector<16x128xf32>
    %5 = tpu.matmul %3, %4, %cst {dimension_numbers = #tpu.dot_dimension_numbers<[1], [1], [0], [0], [0, 0, 1, 0], [], []>} : vector<16x128xf32>, vector<128x128xf32>, vector<16x128xf32> -> vector<16x128xf32>
    %c0_4 = arith.constant 0 : index
    %c0_5 = arith.constant 0 : index
    %6 = vector.load %arg4[%c0_4, %c0_5] : memref<128x128xf32, #tpu.memory_space<vmem>>, vector<128x128xf32>
    %cst_6 = arith.constant dense<0.000000e+00> : vector<16x128xf32>
    %7 = tpu.matmul %3, %6, %cst_6 {dimension_numbers = #tpu.dot_dimension_numbers<[1], [1], [0], [0], [0, 0, 1, 0], [], []>} : vector<16x128xf32>, vector<128x128xf32>, vector<16x128xf32> -> vector<16x128xf32>
    %8 = arith.index_cast %arg1 : i32 to index
    %c0_7 = arith.constant 0 : index
    %9 = vector.load %arg5[%8, %c0_7] : memref<1x128xf32, #tpu.memory_space<vmem>>, vector<1x128xf32>
    %10 = vector.broadcast %9 : vector<1x128xf32> to vector<16x128xf32>
    %11 = arith.addf %5, %10 : vector<16x128xf32>
    %12 = arith.index_cast %arg1 : i32 to index
    %c0_8 = arith.constant 0 : index
    %13 = vector.load %arg6[%12, %c0_8] : memref<1x128xf32, #tpu.memory_space<vmem>>, vector<1x128xf32>
    %14 = vector.broadcast %13 : vector<1x128xf32> to vector<16x128xf32>
    %15 = arith.addf %7, %14 : vector<16x128xf32>
    %16 = arith.negf %11 : vector<16x128xf32>
    %17 = math.exp %16 : vector<16x128xf32>
    %cst_9 = arith.constant 1.000000e+00 : f32
    %18 = vector.broadcast %cst_9 : f32 to vector<16x128xf32>
    %19 = arith.addf %18, %17 : vector<16x128xf32>
    %20 = arith.divf %18, %19 : vector<16x128xf32>
    %21 = arith.mulf %11, %20 : vector<16x128xf32>
    %22 = arith.mulf %21, %15 : vector<16x128xf32>
    %c0_10 = arith.constant 0 : index
    %c0_11 = arith.constant 0 : index
    %23 = vector.load %arg10[%c0_10, %c0_11] : memref<16x128xf32, #tpu.memory_space<vmem>>, vector<16x128xf32>
    %c0_12 = arith.constant 0 : index
    %c0_13 = arith.constant 0 : index
    %24 = vector.load %arg7[%c0_12, %c0_13] : memref<128x128xf32, #tpu.memory_space<vmem>>, vector<128x128xf32>
    %cst_14 = arith.constant dense<0.000000e+00> : vector<16x128xf32>
    %25 = tpu.matmul %22, %24, %cst_14 {dimension_numbers = #tpu.dot_dimension_numbers<[1], [1], [0], [0], [0, 0, 1, 0], [], []>} : vector<16x128xf32>, vector<128x128xf32>, vector<16x128xf32> -> vector<16x128xf32>
    %26 = arith.addf %23, %25 : vector<16x128xf32>
    %c0_15 = arith.constant 0 : index
    %c0_16 = arith.constant 0 : index
    %27 = vector.load %arg10[%c0_15, %c0_16] : memref<16x128xf32, #tpu.memory_space<vmem>>, vector<16x128xf32>
    tpu.vector_store %arg10[%c0_15, %c0_16], %26 {strides = array<i32>} : memref<16x128xf32, #tpu.memory_space<vmem>>, vector<16x128xf32>,
    %c0_i32_17 = arith.constant 0 : i32
    %28 = arith.cmpi eq, %arg1, %c0_i32_17 : i32
    %29 = arith.extui %28 : i1 to i32
    %c0_i32_18 = arith.constant 0 : i32
    %30 = arith.cmpi ne, %29, %c0_i32_18 : i32
    scf.if %30 {
      %c0_19 = arith.constant 0 : index
      %c0_20 = arith.constant 0 : index
      %31 = vector.load %arg10[%c0_19, %c0_20] : memref<16x128xf32, #tpu.memory_space<vmem>>, vector<16x128xf32>
      %c0_21 = arith.constant 0 : index
      %c0_22 = arith.constant 0 : index
      %32 = vector.load %arg8[%c0_21, %c0_22] : memref<1x128xf32, #tpu.memory_space<vmem>>, vector<1x128xf32>
      %33 = vector.broadcast %32 : vector<1x128xf32> to vector<16x128xf32>
      %34 = arith.addf %31, %33 : vector<16x128xf32>
      %c0_23 = arith.constant 0 : index
      %c0_24 = arith.constant 0 : index
      %35 = vector.load %arg9[%c0_23, %c0_24] : memref<16x128xf32, #tpu.memory_space<vmem>>, vector<16x128xf32>
      tpu.vector_store %arg9[%c0_23, %c0_24], %34 {strides = array<i32>} : memref<16x128xf32, #tpu.memory_space<vmem>>, vector<16x128xf32>,
    } else {
    }
    return
  }
  func.func @transform_0(%arg0: i32, %arg1: i32) -> (i32, i32) {
    %c0_i32 = arith.constant 0 : i32
    %c0_i32_0 = arith.constant 0 : i32
    return %arg0, %c0_i32 : i32, i32
  }
  func.func @transform_1(%arg0: i32, %arg1: i32) -> (i32, i32) {
    %c0_i32 = arith.constant 0 : i32
    %c0_i32_0 = arith.constant 0 : i32
    return %arg1, %c0_i32 : i32, i32
  }
  func.func @transform_2(%arg0: i32, %arg1: i32) -> (i32, i32) {
    %c0_i32 = arith.constant 0 : i32
    %c0_i32_0 = arith.constant 0 : i32
    return %arg1, %c0_i32 : i32, i32
  }
  func.func @transform_3(%arg0: i32, %arg1: i32) -> (i32, i32) {
    %c0_i32 = arith.constant 0 : i32
    %c0_i32_0 = arith.constant 0 : i32
    %c0_i32_1 = arith.constant 0 : i32
    return %c0_i32, %c0_i32_0 : i32, i32
  }
  func.func @transform_4(%arg0: i32, %arg1: i32) -> (i32, i32) {
    %c0_i32 = arith.constant 0 : i32
    %c0_i32_0 = arith.constant 0 : i32
    %c0_i32_1 = arith.constant 0 : i32
    return %c0_i32, %c0_i32_0 : i32, i32
  }
  func.func @transform_5(%arg0: i32, %arg1: i32) -> (i32, i32) {
    %c0_i32 = arith.constant 0 : i32
    %c0_i32_0 = arith.constant 0 : i32
    return %c0_i32, %arg1 : i32, i32
  }
  func.func @transform_6(%arg0: i32, %arg1: i32) -> (i32, i32) {
    %c0_i32 = arith.constant 0 : i32
    %c0_i32_0 = arith.constant 0 : i32
    %c0_i32_1 = arith.constant 0 : i32
    return %c0_i32, %c0_i32_0 : i32, i32
  }
  func.func @transform_7(%arg0: i32, %arg1: i32) -> (i32, i32) {
    %c0_i32 = arith.constant 0 : i32
    %c0_i32_0 = arith.constant 0 : i32
    return %arg0, %c0_i32 : i32, i32
  }
}

</mosaic_0001>

<bundles_post_ra>
// kernel: tpu_custom_call.1
= control target key start
LH: loop header
LB: loop body
LE: loop exit
PB: predicated region body
PF: predicated region fallthrough
CT: control target
= control target key end

     0   :  { %12 = vsyncpa [#allocation4], 0  ;;  %s555_s0 = inlined_call_operand.hbm [shape: f32[16,128], index: 0, kind: input, shape index: {}]   ;;  %s556_s1 = inlined_call_operand.hbm [shape: f32[128,128], index: 1, kind: input, shape index: {}]   ;;  %s557_s2 = inlined_call_operand.hbm [shape: f32[128,128], index: 2, kind: input, shape index: {}]   ;;  %s558_s3 = inlined_call_operand.vmem [shape: f32[1,128], index: 3, kind: input, shape index: {}]   ;;  %s559_s4 = inlined_call_operand.vmem [shape: f32[1,128], index: 4, kind: input, shape index: {}]   ;;  %s560_s5 = inlined_call_operand.hbm [shape: f32[128,128], index: 5, kind: input, shape index: {}]   ;;  %s561_s6 = inlined_call_operand.vmem [shape: f32[1,128], index: 6, kind: input, shape index: {}]   ;;  %s562_s7 = inlined_call_operand.hbm [shape: f32[16,128], index: 7, kind: output, shape index: {}]  }
   0x1   :  { %13 = vsyncpa [#allocation7], 0 }
   0x2   :  { %14 = vsyncpa [#allocation10], 0 }
   0x3   :  { %15 = vsyncpa [#allocation5], 0  ;;  %s33_s26 = sshll.u32 %s556_s1, 4  ;;  %s469_s27 = smov [#allocation6]   ;;  %s34_s26 = int_to_ptr.hbm [resolvable:$true] %s33_s26 }
   0x4   :  { %s35_s28 = sshll.u32 %s469_s27, 4  ;;  %s20_s8 = sshll.u32 %s555_s0, 4  ;;  %s36_s28 = int_to_ptr.vmem [resolvable:$true] %s35_s28  ;;  %s21_s8 = int_to_ptr.hbm [resolvable:$true] %s20_s8 }
   0x5   :  { %s470_s9 = smov 128   ;;  %s471_s10 = smov 8  }
   0x6   :  { %41 = dma.hbm_to_vmem [thread:$0]  %s34_s26, 2048, %s36_s28, [#allocation7], %s470_s9, %s470_s9, %s471_s10  }
   0x7   :  { %s472_s11 = smov [#allocation3]   ;;  %s46_s1 = sshll.u32 %s557_s2, 4  ;;  %s47_s1 = int_to_ptr.hbm [resolvable:$true] %s46_s1 }
   0x8   :  { %s22_s12 = sshll.u32 %s472_s11, 4  ;;  %s63_s16 = sshll.u32 %s560_s5, 4  ;;  %s23_s12 = int_to_ptr.vmem [resolvable:$true] %s22_s12  ;;  %s64_s16 = int_to_ptr.hbm [resolvable:$true] %s63_s16 }
   0x9   :  { %28 = dma.hbm_to_vmem [thread:$0]  %s21_s8, 256, %s23_s12, [#allocation4], %s470_s9, %s470_s9, %s471_s10  }
   0xa   :  { %s473_s17 = smov [#allocation8]   ;;  %s474_s19 = smov [#allocation9]  }
   0xb   :  { %s48_s18 = sshll.u32 %s473_s17, 4  ;;  %s65_s2 = sshll.u32 %s474_s19, 4  ;;  %s49_s18 = int_to_ptr.vmem [resolvable:$true] %s48_s18  ;;  %s66_s2 = int_to_ptr.vmem [resolvable:$true] %s65_s2 }
   0xc   :  { %54 = dma.hbm_to_vmem [thread:$0]  %s47_s1, 2048, %s49_s18, [#allocation7], %s470_s9, %s470_s9, %s471_s10  }
   0xd   :  { %71 = dma.hbm_to_vmem [thread:$0]  %s64_s16, 2048, %s66_s2, [#allocation10], %s470_s9, %s470_s9, %s471_s10  }
   0xe   :  { %461 = dma.done.wait [#allocation4], 256  }
   0xf   :  { %462 = vsyncadd [#allocation4], 4294967040 }
  0x10   :  { %463 = dma.done.wait [#allocation7], 4096  }
  0x11   :  { %464 = vsyncadd [#allocation7], 4294963200 }
  0x12   :  { %465 = dma.done.wait [#allocation10], 2048  }
  0x13   :  { %466 = vsyncadd [#allocation10], 4294965248  ;;  %v113_v0 = vld [vmem:[#allocation6 + $0x78] sm:$0xff]  ;;  %v112_v1 = vld [vmem:[#allocation6 + $0x70] sm:$0xff]  ;;  %s475_s23 = smov [#allocation11]   ;;  %s290_s27 = sshll.u32 %s562_s7, 4  ;;  %s291_s27 = int_to_ptr.hbm [resolvable:$true] %s290_s27 }
  0x14   :  { %134 = vmatpush.xpose.msra.mxu0 %v113_v0  ;;  %307 = vmatpush.xpose.msra.mxu3 %v113_v0  ;;  %v129_v2 = vld [vmem:[#allocation8 + $0x78] sm:$0xff]  ;;  %v128_v3 = vld [vmem:[#allocation8 + $0x70] sm:$0xff]  ;;  %v111_v4 = vld [vmem:[#allocation6 + $0x68] sm:$0xff]  ;;  %s288_s24 = sshll.u32 %s475_s23, 4  ;;  %s289_s24 = int_to_ptr.vmem [resolvable:$true] %s288_s24 }
  0x15   :  { %161 = vmatpush.xpose.msra.mxu1 %v129_v2  ;;  %v127_v5 = vld [vmem:[#allocation8 + $0x68] sm:$0xff]  ;;  %v110_v6 = vld [vmem:[#allocation6 + $0x60] sm:$0xff]  ;;  %v109_v8 = vld [vmem:[#allocation6 + $0x58] sm:$0xff] }
  0x16   :  { %v126_v7 = vld [vmem:[#allocation8 + $0x60] sm:$0xff]  ;;  %v125_v9 = vld [vmem:[#allocation8 + $0x58] sm:$0xff]  ;;  %v108_v10 = vld [vmem:[#allocation6 + $0x50] sm:$0xff] }
  0x17   :  { %v124_v11 = vld [vmem:[#allocation8 + $0x50] sm:$0xff]  ;;  %v107_v12 = vld [vmem:[#allocation6 + $0x48] sm:$0xff]  ;;  %v106_v14 = vld [vmem:[#allocation6 + $0x40] sm:$0xff] }
  0x18   :  { %135 = vmatpush.xpose.msra.mxu0 %v112_v1  ;;  %308 = vmatpush.xpose.msra.mxu3 %v112_v1  ;;  %v123_v13 = vld [vmem:[#allocation8 + $0x48] sm:$0xff]  ;;  %v122_v15 = vld [vmem:[#allocation8 + $0x40] sm:$0xff]  ;;  %v105_v16 = vld [vmem:[#allocation6 + $0x38] sm:$0xff] }
  0x19   :  { %162 = vmatpush.xpose.msra.mxu1 %v128_v3  ;;  %v121_v17 = vld [vmem:[#allocation8 + $0x38] sm:$0xff]  ;;  %v104_v18 = vld [vmem:[#allocation6 + $0x30] sm:$0xff]  ;;  %v103_v20 = vld [vmem:[#allocation6 + $0x28] sm:$0xff] }
  0x1a   :  { %v120_v19 = vld [vmem:[#allocation8 + $0x30] sm:$0xff]  ;;  %v119_v21 = vld [vmem:[#allocation8 + $0x28] sm:$0xff]  ;;  %v102_v22 = vld [vmem:[#allocation6 + $0x20] sm:$0xff] }
  0x1b   :  { %v243_v23 = vld [vmem:[#allocation9 + $0x78] sm:$0xff]  ;;  %v118_v24 = vld [vmem:[#allocation8 + $0x20] sm:$0xff]  ;;  %v242_v25 = vld [vmem:[#allocation9 + $0x70] sm:$0xff] }
  0x1c   :  { %136 = vmatpush.xpose.msra.mxu0 %v111_v4  ;;  %309 = vmatpush.xpose.msra.mxu3 %v111_v4  ;;  %v101_v26 = vld [vmem:[#allocation6 + $0x18] sm:$0xff]  ;;  %v241_v28 = vld [vmem:[#allocation9 + $0x68] sm:$0xff]  ;;  %v100_v29 = vld [vmem:[#allocation6 + $0x10] sm:$0xff] }
  0x1d   :  { %163 = vmatpush.xpose.msra.mxu1 %v127_v5  ;;  %244 = vmatpush.xpose.msra.mxu2 %v243_v23  ;;  %v117_v27 = vld [vmem:[#allocation8 + $0x18] sm:$0xff]  ;;  %v116_v30 = vld [vmem:[#allocation8 + $0x10] sm:$0xff]  ;;  %v240_v31 = vld [vmem:[#allocation9 + $0x60] sm:$0xff] }
  0x1e   :  { %v99_v32 = vld [vmem:[#allocation6 + $0x8] sm:$0xff]  ;;  %v239_v34 = vld [vmem:[#allocation9 + $0x58] sm:$0xff]  ;;  %v98_v35 = vld [vmem:[#allocation6] sm:$0xff] }
  0x1f   :  { %v115_v33 = vld [vmem:[#allocation8 + $0x8] sm:$0xff]  ;;  %v114_v36 = vld [vmem:[#allocation8] sm:$0xff]  ;;  %v238_v37 = vld [vmem:[#allocation9 + $0x50] sm:$0xff] }
  0x20   :  { %137 = vmatpush.xpose.msra.mxu0 %v110_v6  ;;  %310 = vmatpush.xpose.msra.mxu3 %v110_v6  ;;  %v96_v38 = vld [vmem:[#allocation3] sm:$0xff]  ;;  %v97_v39 = vld [vmem:[#allocation3 + $0x8] sm:$0xff]  ;;  %v237_v40 = vld [vmem:[#allocation9 + $0x48] sm:$0xff] }
  0x21   :  { %164 = vmatpush.xpose.msra.mxu1 %v126_v7  ;;  %245 = vmatpush.xpose.msra.mxu2 %v242_v25  ;;  %v236_v41 = vld [vmem:[#allocation9 + $0x40] sm:$0xff]  ;;  %v235_v42 = vld [vmem:[#allocation9 + $0x38] sm:$0xff]  ;;  %v234_v43 = vld [vmem:[#allocation9 + $0x30] sm:$0xff] }
  0x22   :  { %v233_v44 = vld [vmem:[#allocation9 + $0x28] sm:$0xff]  ;;  %v232_v45 = vld [vmem:[#allocation9 + $0x20] sm:$0xff]  ;;  %v231_v46 = vld [vmem:[#allocation9 + $0x18] sm:$0xff] }
  0x23   :  { %v230_v47 = vld [vmem:[#allocation9 + $0x10] sm:$0xff]  ;;  %v229_v48 = vld [vmem:[#allocation9 + $0x8] sm:$0xff]  ;;  %v228_v50 = vld [vmem:[#allocation9] sm:$0xff] }
  0x24   :  { %138 = vmatpush.xpose.msra.mxu0 %v109_v8  ;;  %311 = vmatpush.xpose.msra.mxu3 %v109_v8  ;;  %v330_v49 = vld [vmem:[%s558_s3] ss:$0 sm:$0xff] }
  0x25   :  { %165 = vmatpush.xpose.msra.mxu1 %v125_v9  ;;  %246 = vmatpush.xpose.msra.mxu2 %v241_v28  ;;  %v331_v4 = vld [vmem:[%s559_s4] ss:$0 sm:$0xff] }
  0x28   :  { %139 = vmatpush.xpose.msra.mxu0 %v108_v10  ;;  %312 = vmatpush.xpose.msra.mxu3 %v108_v10 }
  0x29   :  { %166 = vmatpush.xpose.msra.mxu1 %v124_v11  ;;  %247 = vmatpush.xpose.msra.mxu2 %v240_v31 }
  0x2c   :  { %140 = vmatpush.xpose.msra.mxu0 %v107_v12  ;;  %313 = vmatpush.xpose.msra.mxu3 %v107_v12 }
  0x2d   :  { %167 = vmatpush.xpose.msra.mxu1 %v123_v13  ;;  %248 = vmatpush.xpose.msra.mxu2 %v239_v34 }
  0x30   :  { %141 = vmatpush.xpose.msra.mxu0 %v106_v14  ;;  %314 = vmatpush.xpose.msra.mxu3 %v106_v14 }
  0x31   :  { %168 = vmatpush.xpose.msra.mxu1 %v122_v15  ;;  %249 = vmatpush.xpose.msra.mxu2 %v238_v37 }
  0x34   :  { %142 = vmatpush.xpose.msra.mxu0 %v105_v16  ;;  %315 = vmatpush.xpose.msra.mxu3 %v105_v16 }
  0x35   :  { %169 = vmatpush.xpose.msra.mxu1 %v121_v17  ;;  %250 = vmatpush.xpose.msra.mxu2 %v237_v40 }
  0x38   :  { %143 = vmatpush.xpose.msra.mxu0 %v104_v18  ;;  %316 = vmatpush.xpose.msra.mxu3 %v104_v18 }
  0x39   :  { %170 = vmatpush.xpose.msra.mxu1 %v120_v19  ;;  %251 = vmatpush.xpose.msra.mxu2 %v236_v41 }
  0x3c   :  { %144 = vmatpush.xpose.msra.mxu0 %v103_v20  ;;  %317 = vmatpush.xpose.msra.mxu3 %v103_v20 }
  0x3d   :  { %171 = vmatpush.xpose.msra.mxu1 %v119_v21  ;;  %252 = vmatpush.xpose.msra.mxu2 %v235_v42 }
  0x40   :  { %145 = vmatpush.xpose.msra.mxu0 %v102_v22  ;;  %318 = vmatpush.xpose.msra.mxu3 %v102_v22 }
  0x41   :  { %172 = vmatpush.xpose.msra.mxu1 %v118_v24  ;;  %253 = vmatpush.xpose.msra.mxu2 %v234_v43 }
  0x44   :  { %146 = vmatpush.xpose.msra.mxu0 %v101_v26  ;;  %319 = vmatpush.xpose.msra.mxu3 %v101_v26  ;;  %v332_v26 = vld [vmem:[%s561_s6] ss:$0 sm:$0xff] }
  0x45   :  { %173 = vmatpush.xpose.msra.mxu1 %v117_v27  ;;  %254 = vmatpush.xpose.msra.mxu2 %v233_v44 }
  0x48   :  { %147 = vmatpush.xpose.msra.mxu0 %v100_v29  ;;  %320 = vmatpush.xpose.msra.mxu3 %v100_v29 }
  0x49   :  { %174 = vmatpush.xpose.msra.mxu1 %v116_v30  ;;  %255 = vmatpush.xpose.msra.mxu2 %v232_v45 }
  0x4c   :  { %148 = vmatpush.xpose.msra.mxu0 %v99_v32  ;;  %321 = vmatpush.xpose.msra.mxu3 %v99_v32 }
  0x4d   :  { %175 = vmatpush.xpose.msra.mxu1 %v115_v33  ;;  %256 = vmatpush.xpose.msra.mxu2 %v231_v46 }
  0x50   :  { %149 = vmatpush.xpose.msra.mxu0 %v98_v35  ;;  %322 = vmatpush.xpose.msra.mxu3 %v98_v35 }
  0x51   :  { %176 = vmatpush.xpose.msra.mxu1 %v114_v36  ;;  %257 = vmatpush.xpose.msra.mxu2 %v230_v47 }
  0x53   :  { %150 = vmatmul.f32.vlgmr.msra.gmra.mxu0 %v96_v38  ;;  %153 = vmatmul.f32.vlgmr.msra.gmra.mxu3 %v97_v39 }
  0x54   :  { %177 = vmatmul.f32.vlgmr.msra.gmra.mxu1 %v96_v38 }
  0x55   :  { %258 = vmatpush.xpose.msra.mxu2 %v229_v48 }
  0x59   :  { %259 = vmatpush.xpose.msra.mxu2 %v228_v50 }
  0x5c   :  { %180 = vmatmul.f32.gmra.mxu1 %v97_v39 }
  0xd0   :  { %v151_v51 = vpop.f32.mrf.mxu0 }
  0xd1   :  { %v152_v52 = vadd.f32 %v330_v49, %v151_v51  ;;  %v178_v1 = vpop.f32.mrf.mxu1 }
  0xd2   :  { %v179_v11 = vadd.f32 %v331_v4, %v178_v1 }
  0xd3   :  { %v305_v53 = vmul.f32 -1.442695, %v152_v52 }
  0xd5   :  { %333 = vpow2.f32 %v305_v53 }
  0xd6   :  { %v154_v54 = vpop.f32.mrf.mxu3 }
  0xd7   :  { %v155_v55 = vadd.f32 %v330_v49, %v154_v54 }
  0xd9   :  { %v306_v56 = vmul.f32 -1.442695, %v155_v55  ;;  %v181_v20 = vpop.f32.mrf.mxu1 }
  0xda   :  { %v182_v24 = vadd.f32 %v331_v4, %v181_v20 }
  0xdb   :  { %v334_v57 = vpop.eup %333  ;;  %335 = vpow2.f32 %v306_v56 }
  0xdc   :  { %v190_v58 = vadd.f32 1.0, %v334_v57 }
  0xde   :  { %337 = vrcp.f32 %v190_v58  ;;  %v203_v0 = vand.u32 2147483648, %v190_v58  ;;  %v201_v3 = vand.u32 2147483647, %v190_v58  ;;  %vm197_vm1 = vweird.f32 %v190_v58 }
  0xe0   :  { %v204_v8 = vor.u32 1.1754944e-38, %v203_v0  ;;  %vm202_vm3 = vcmp.eq.f32.partialorder %v201_v3, 8.507059e+37 }
  0xe1   :  { %v336_v59 = vpop.eup %335 }
  0xe2   :  { %v191_v60 = vadd.f32 1.0, %v336_v59 }
  0xe4   :  { %v338_v61 = vpop.eup %337  ;;  %339 = vrcp.f32 %v191_v60  ;;  %v218_v13 = vand.u32 2147483648, %v191_v60  ;;  %v216_v16 = vand.u32 2147483647, %v191_v60  ;;  %vm212_vm5 = vweird.f32 %v191_v60 }
  0xe5   :  { %v193_v62 = vmul.f32 %v338_v61, %v190_v58  ;;  %vm198_vm0 = vweird.f32 %v338_v61 }
  0xe6   :  { %vm199_vm2 = vmor %vm197_vm1, %vm198_vm0  ;;  %v219_v19 = vor.u32 1.1754944e-38, %v218_v13  ;;  %vm217_vm7 = vcmp.eq.f32.partialorder %v216_v16, 8.507059e+37 }
  0xe7   :  { %v194_v63 = vsub.f32 1.0, %v193_v62 }
  0xe9   :  { %v195_v2 = vmul.f32 %v338_v61, %v194_v63 }
  0xea   :  { %v340_v5 = vpop.eup %339 }
  0xeb   :  { %v196_v6 = vadd.f32 %v338_v61, %v195_v2  ;;  %v208_v7 = vmul.f32 %v340_v5, %v191_v60  ;;  %vm213_vm4 = vweird.f32 %v340_v5 }
  0xec   :  { %vm214_vm6 = vmor %vm212_vm5, %vm213_vm4 }
  0xed   :  { %v200_v9 = vsel %vm199_vm2, %v338_v61, %v196_v6  ;;  %v209_v10 = vsub.f32 1.0, %v208_v7 }
  0xee   :  { %v205_v12 = vsel %vm202_vm3, %v204_v8, %v200_v9 }
  0xef   :  { %v222_v14 = vmul.f32 %v205_v12, %v152_v52  ;;  %v210_v15 = vmul.f32 %v340_v5, %v209_v10 }
  0xf1   :  { %v211_v17 = vadd.f32 %v340_v5, %v210_v15  ;;  %v224_v18 = vmul.f32 %v222_v14, %v179_v11 }
  0xf3   :  { %v215_v21 = vsel %vm214_vm6, %v340_v5, %v211_v17  ;;  %260 = vmatmul.f32.vlgmr.msra.gmra.mxu2 %v224_v18 }
  0xf4   :  { %v220_v22 = vsel %vm217_vm7, %v219_v19, %v215_v21 }
  0xf5   :  { %v223_v23 = vmul.f32 %v220_v22, %v155_v55 }
  0xf7   :  { %v225_v25 = vmul.f32 %v223_v23, %v182_v24 }
  0xfb   :  { %263 = vmatmul.f32.gmra.mxu2 %v225_v25 }
 0x176   :  { %v261_v27 = vpop.f32.mrf.mxu2 }
 0x177   :  { %v280_v28 = vadd.f32 %v332_v26, %v261_v27 }
 0x179   :  { %282 = vst [vmem:[#allocation11] sm:$0xff] %v280_v28 }
 0x17e   :  { %v264_v29 = vpop.f32.mrf.mxu2 }
 0x17f   :  { %v281_v30 = vadd.f32 %v332_v26, %v264_v29 }
 0x181   :  { %283 = vst [vmem:[#allocation11 + $0x8] sm:$0xff] %v281_v30 }
 0x182   :  { %296 = dma.vmem_to_hbm [thread:$0]  %s289_s24, 256, %s291_s27, [#allocation5], %s470_s9, %s470_s9, %s471_s10  }
 0x183   :  { %467 = dma.done.wait [#allocation5], 256  }
 0x184   :  { %468 = vsyncadd [#allocation5], 4294967040 }
 0x185   :  { %301 = vsyncpa [#allocation4], 1 }
 0x186   :  { %302 = vsyncpa [#allocation7], 1 }
 0x187   :  { %303 = vsyncpa [#allocation10], 1 }
 0x188   :  { %304 = vsyncpa [#allocation5], 1 }

</bundles_post_ra>
